<compile_context>
chip_gen: v7x
topology: tpu7x:2x2x1
jax: 0.10.0
libtpu: 0.0.40
codegen_flags: <defaults>
</compile_context>

<pallas_src>
import functools

import jax
import jax.numpy as jnp
from jax import lax
from jax.experimental import pallas as pl
from jax.experimental.pallas import tpu as pltpu

F32 = jnp.float32
BF16 = jnp.bfloat16


def _layer_norm(x, gamma, beta, eps=1e-5):
    mu = jnp.mean(x, axis=-1, keepdims=True)
    var = jnp.mean((x - mu) ** 2, axis=-1, keepdims=True)
    return (x - mu) * lax.rsqrt(var + eps) * gamma + beta


# ----------------------------------------------------------------------------
# Pass 1: per-batch K / V projection, written head-split as (B, H, N, Dh) bf16
# ----------------------------------------------------------------------------
def _kv_proj_kernel(*refs, num_heads, head_dim, v_is_k):
    if v_is_k:
        k_ref, g1_ref, b1_ref, wk_ref, wv_ref, kh_ref, vh_ref = refs
        v_ref = None
    else:
        k_ref, v_ref, g1_ref, b1_ref, wk_ref, wv_ref, kh_ref, vh_ref = refs

    g1 = g1_ref[...].astype(F32)
    b1 = b1_ref[...].astype(F32)

    lnk = _layer_norm(k_ref[0].astype(F32), g1, b1).astype(BF16)          # (N, C)
    kp = jnp.dot(lnk, wk_ref[...], preferred_element_type=F32).astype(BF16)
    if v_is_k:
        lnv = lnk                              # self-attention: skip duplicate LN
    else:
        lnv = _layer_norm(v_ref[0].astype(F32), g1, b1).astype(BF16)
    vp = jnp.dot(lnv, wv_ref[...], preferred_element_type=F32).astype(BF16)

    # head-split once per batch into the (H, N, Dh) layout pass 2 consumes
    for h in range(num_heads):
        sl = slice(h * head_dim, (h + 1) * head_dim)
        kh_ref[0, h] = kp[:, sl]
        vh_ref[0, h] = vp[:, sl]


# ----------------------------------------------------------------------------
# Pass 2: attention + MLP per (batch, q-tile); both grid axes parallel
# ----------------------------------------------------------------------------
def _block_kernel(
    q_ref, kh_ref, vh_ref, mask_ref,
    g1_ref, b1_ref, g2_ref, b2_ref,
    wq_ref, wproj_ref, bproj_ref,
    w1_ref, bfc1_ref, w2_ref, bfc2_ref,
    out_ref,
    q_scr, cat_scr,
    *, num_heads, head_dim,
):
    scale = head_dim ** (-0.5)

    q_in = q_ref[0].astype(F32)            # (TQ, C)
    mask = mask_ref[0, 0].astype(F32)      # (TQ, N)

    # ---- attention branch: attn(norm1(q), norm1(k), norm1(v)) --------------
    g1 = g1_ref[...].astype(F32)
    b1 = b1_ref[...].astype(F32)
    lnq = _layer_norm(q_in, g1, b1)
    # fold 1/sqrt(Dh) into Q (q/k/v Linear have no bias -> exactly equivalent)
    Q = jnp.dot((lnq * scale).astype(BF16), wq_ref[...],
                preferred_element_type=F32).astype(BF16)                 # (TQ, C)

    # pack Q heads once into (H, TQ, Dh); K/V already arrive head-split
    for h in range(num_heads):
        q_scr[h] = Q[:, h * head_dim:(h + 1) * head_dim]
    Qh = q_scr[...]                        # (H, TQ, Dh) bf16
    K = kh_ref[0]                          # (H, N,  Dh) bf16
    V = vh_ref[0]                          # (H, N,  Dh) bf16

    # head-batched scores / softmax / P@V (single MXU stream, no per-head loop)
    s = jnp.einsum("hqd,hkd->hqk", Qh, K, preferred_element_type=F32)    # (H,TQ,N)
    s = s + mask[None, :, :]               # mask broadcasts over heads
    s = s - jnp.max(s, axis=-1, keepdims=True)
    p = jnp.exp(s)
    p = p * pl.reciprocal(jnp.sum(p, axis=-1, keepdims=True), approx=True)
    oh = jnp.einsum("hqk,hkd->hqd", p.astype(BF16), V,
                    preferred_element_type=F32).astype(BF16)             # (H,TQ,Dh)

    # concat heads into (TQ, C) and do ONE full-C output projection matmul
    for h in range(num_heads):
        cat_scr[:, h * head_dim:(h + 1) * head_dim] = oh[h]
    proj = (jnp.dot(cat_scr[...], wproj_ref[...], preferred_element_type=F32)
            + bproj_ref[...].astype(F32))

    x1 = q_in + proj                       # first residual

    # ---- MLP branch: x1 + mlp(norm2(x1)) ------------------------------------
    g2 = g2_ref[...].astype(F32)
    b2 = b2_ref[...].astype(F32)
    lnx = _layer_norm(x1, g2, b2)
    h1 = (jnp.dot(lnx.astype(BF16), w1_ref[...], preferred_element_type=F32)
          + bfc1_ref[...].astype(F32))
    h1 = jax.nn.gelu(h1, approximate=False)   # nn.GELU default = exact erf
    h2 = (jnp.dot(h1.astype(BF16), w2_ref[...], preferred_element_type=F32)
          + bfc2_ref[...].astype(F32))

    out_ref[0] = (x1 + h2).astype(out_ref.dtype)


# ----------------------------------------------------------------------------
# Wrapper
# ----------------------------------------------------------------------------
def block_selfcrossmask(q, k=None, v=None, mask=None, params=None, *,
                        num_heads, q_tile=256):
    """Block_SelfCrossMask.forward(q, k, v, mask).  q/k/v: (B, N, C)."""
    if k is None:
        k = q
    if v is None:
        v = k
    v_is_k = v is k

    B, N, C = q.shape
    assert C % num_heads == 0
    Dh = C // num_heads
    hidden = params["w1"].shape[1]

    if mask is None:
        mask = jnp.zeros((B, 1, N, N), q.dtype)

    # q-tile: amortizes per-step overhead; lower (e.g. 128) for v7x at large C/N.
    TQ = min(N, q_tile)
    assert N % TQ == 0 and (TQ == N or TQ % 8 == 0)
    n_q_tiles = N // TQ

    # bf16 activation / mask streams (halves HBM DMA and input VMEM windows;
    # all matmuls accumulate in f32).  NOTE: bf16 mask is exact for hard masks
    # ({0, -1e4, -inf}); keep f32 if the mask carries real-valued biases.
    q_bf = q.astype(BF16)
    k_bf = k.astype(BF16)
    v_bf = None if v_is_k else v.astype(BF16)
    mask_bf = mask.astype(BF16)

    # bf16 weights (halves weight DMA + resident VMEM).
    wq, wk, wv = (params[n].astype(BF16) for n in ("wq", "wk", "wv"))
    wproj = params["wproj"].astype(BF16)
    w1, w2 = params["w1"].astype(BF16), params["w2"].astype(BF16)

    def resident():
        # whole array resident in VMEM, single copy, no per-step DMA
        return pl.BlockSpec(memory_space=pltpu.MemorySpace.VMEM)

    lane = 128
    dh_pad = -(-Dh // lane) * lane          # lane padding of head-split blocks

    # ---------------------------- pass 1 ------------------------------------
    kv_in_specs = [pl.BlockSpec((1, N, C), lambda b: (b, 0, 0))]
    kv_args = [k_bf]
    if not v_is_k:
        kv_in_specs.append(pl.BlockSpec((1, N, C), lambda b: (b, 0, 0)))
        kv_args.append(v_bf)
    kv_in_specs += [resident(), resident(), resident(), resident()]
    kv_args += [params["g1"], params["b1"], wk, wv]

    kv_est = (2 * C * C * 2                               # wk, wv (bf16)
              + (1 if v_is_k else 2) * 2 * N * C * 2      # streamed k/v windows
              + 2 * 2 * num_heads * N * dh_pad * 2        # kh/vh out windows
              + 6 * N * C * 4)                            # f32 intermediates
    kv_limit = int(min(max(kv_est * 2, 32 << 20), 96 << 20))

    kh, vh = pl.pallas_call(
        functools.partial(_kv_proj_kernel, num_heads=num_heads, head_dim=Dh,
                          v_is_k=v_is_k),
        out_shape=(jax.ShapeDtypeStruct((B, num_heads, N, Dh), BF16),
                   jax.ShapeDtypeStruct((B, num_heads, N, Dh), BF16)),
        grid_spec=pltpu.PrefetchScalarGridSpec(
            num_scalar_prefetch=0,
            grid=(B,),
            in_specs=kv_in_specs,
            out_specs=(
                pl.BlockSpec((1, num_heads, N, Dh), lambda b: (b, 0, 0, 0)),
                pl.BlockSpec((1, num_heads, N, Dh), lambda b: (b, 0, 0, 0)),
            ),
        ),
        compiler_params=pltpu.CompilerParams(
            dimension_semantics=("parallel",),
            vmem_limit_bytes=kv_limit,
        ),
    )(*kv_args)

    # ---------------------------- pass 2 ------------------------------------
    est = (
        (2 * C * C + 2 * C * hidden) * 2 + (8 * C + 2 * hidden) * 4   # resident
        + 2 * 2 * TQ * C * 2                                          # q stream
        + 2 * 2 * 2 * num_heads * N * dh_pad * 2                      # kh + vh
        + 2 * 2 * TQ * max(N, lane) * 2                               # mask
        + 2 * TQ * C * 4                                              # out window
        + num_heads * TQ * dh_pad * 2 + TQ * C * 2                    # scratch
        + 3 * num_heads * TQ * max(N, lane) * 4                       # scores/p
        + 2 * TQ * hidden * 4 + 8 * TQ * C * 4                        # mlp/f32 tmps
    )
    limit = int(min(max(est * 2, 32 << 20), 96 << 20))

    return pl.pallas_call(
        functools.partial(_block_kernel, num_heads=num_heads, head_dim=Dh),
        out_shape=jax.ShapeDtypeStruct((B, N, C), q.dtype),
        grid_spec=pltpu.PrefetchScalarGridSpec(
            num_scalar_prefetch=0,
            grid=(B, n_q_tiles),
            in_specs=[
                pl.BlockSpec((1, TQ, C), lambda b, i: (b, i, 0)),              # q tile
                pl.BlockSpec((1, num_heads, N, Dh), lambda b, i: (b, 0, 0, 0)),  # K heads
                pl.BlockSpec((1, num_heads, N, Dh), lambda b, i: (b, 0, 0, 0)),  # V heads
                pl.BlockSpec((1, 1, TQ, N), lambda b, i: (b, 0, i, 0)),        # mask rows
                resident(), resident(), resident(), resident(),     # norm1/2 g,b
                resident(), resident(), resident(),                 # wq wproj bproj
                resident(), resident(), resident(), resident(),     # w1 bfc1 w2 bfc2
            ],
            out_specs=pl.BlockSpec((1, TQ, C), lambda b, i: (b, i, 0)),
            scratch_shapes=[
                pltpu.VMEM((num_heads, TQ, Dh), BF16),   # packed Q heads
                pltpu.VMEM((TQ, C), BF16),               # concatenated head outputs
            ],
        ),
        compiler_params=pltpu.CompilerParams(
            # both axes are independent now (K/V projection moved to pass 1),
            # so the q-tile axis can also shard across cores (v7x: 2 TCs).
            dimension_semantics=("parallel", "parallel"),
            vmem_limit_bytes=limit,
        ),
    )(
        q_bf, kh, vh, mask_bf,
        params["g1"], params["b1"], params["g2"], params["b2"],
        wq, wproj, params["bproj"],
        w1, params["bfc1"], w2, params["bfc2"],
    )


# ----------------------------------------------------------------------------
# Pure-JAX reference (f32, for verification)
# ----------------------------------------------------------------------------
def reference_forward(q, k, v, mask, params, *, num_heads):
    B, N, C = q.shape
    Dh = C // num_heads
    scale = Dh ** (-0.5)

    def ln(x, g, b, eps=1e-5):
        mu = jnp.mean(x, axis=-1, keepdims=True)
        var = jnp.mean((x - mu) ** 2, axis=-1, keepdims=True)
        return (x - mu) / jnp.sqrt(var + eps) * g + b

    lnq = ln(q, params["g1"][0], params["b1"][0])
    lnk = ln(k, params["g1"][0], params["b1"][0])
    lnv = ln(v, params["g1"][0], params["b1"][0])

    def heads(x, w):
        y = x @ w
        return y.reshape(B, N, num_heads, Dh).transpose(0, 2, 1, 3)

    Q, K, V = heads(lnq, params["wq"]), heads(lnk, params["wk"]), heads(lnv, params["wv"])
    attn = jnp.einsum("bhnd,bhmd->bhnm", Q, K) * scale + mask
    attn = jax.nn.softmax(attn, axis=-1)
    ao = jnp.einsum("bhnm,bhmd->bhnd", attn, V).transpose(0, 2, 1, 3).reshape(B, N, C)
    ao = ao @ params["wproj"] + params["bproj"][0]

    x1 = q + ao
    h = ln(x1, params["g2"][0], params["b2"][0]) @ params["w1"] + params["bfc1"][0]
    h = jax.nn.gelu(h, approximate=False)
    h = h @ params["w2"] + params["bfc2"][0]
    return x1 + h


# ----------------------------------------------------------------------------
# Main
# ----------------------------------------------------------------------------
if __name__ == "__main__":
    B, N, C = 2, 16, 128          # lane-dense C (multiple of 128)
    num_heads = 4                  # head_dim = 32
    mlp_ratio = 4.0
    hidden = int(C * mlp_ratio)

    key = jax.random.PRNGKey(0)
    keys = jax.random.split(key, 12)

    # Deterministic synthetic parameters (weights stored as (in, out)).
    params = {
        "g1": jnp.ones((1, C), jnp.float32),
        "b1": jnp.zeros((1, C), jnp.float32),
        "g2": jnp.ones((1, C), jnp.float32),
        "b2": jnp.zeros((1, C), jnp.float32),
        "wq": jax.random.normal(keys[0], (C, C), jnp.float32) * 0.05,
        "wk": jax.random.normal(keys[1], (C, C), jnp.float32) * 0.05,
        "wv": jax.random.normal(keys[2], (C, C), jnp.float32) * 0.05,
        "wproj": jax.random.normal(keys[3], (C, C), jnp.float32) * 0.05,
        "bproj": jax.random.normal(keys[4], (1, C), jnp.float32) * 0.01,
        "w1": jax.random.normal(keys[5], (C, hidden), jnp.float32) * 0.05,
        "bfc1": jax.random.normal(keys[6], (1, hidden), jnp.float32) * 0.01,
        "w2": jax.random.normal(keys[7], (hidden, C), jnp.float32) * 0.05,
        "bfc2": jax.random.normal(keys[8], (1, C), jnp.float32) * 0.01,
    }

    q = jax.random.normal(keys[9], (B, N, C), jnp.float32)
    k = jax.random.normal(keys[10], (B, N, C), jnp.float32)
    v = k  # forward(): if v is None -> v = k   (exercises the shared-LN path)
    # additive attention mask, broadcast over heads (B, 1, N, N)
    mask = (jax.random.uniform(keys[11], (B, 1, N, N)) < 0.2).astype(jnp.float32) * -1e4

    out = block_selfcrossmask(q, k, v, mask, params, num_heads=num_heads)
    out = jax.block_until_ready(out)

    ref = reference_forward(q, k, v, mask, params, num_heads=num_heads)
    assert out.shape == (B, N, C)
    # tolerance accounts for bf16 activation/weight streams (f32 accumulation)
    assert jnp.allclose(out, ref, rtol=3e-2, atol=3e-2), "mismatch vs reference"

    print("KERNEL_OK")
</pallas_src>

<mosaic_0001>
module attributes {stable_mosaic.version = 11 : i64} {
  func.func @_kv_proj_kernel(%arg0: i32, %arg1: memref<1x16x128xbf16, #tpu.memory_space<vmem>>, %arg2: memref<1x128xf32, #tpu.memory_space<vmem>>, %arg3: memref<1x128xf32, #tpu.memory_space<vmem>>, %arg4: memref<128x128xbf16, #tpu.memory_space<vmem>>, %arg5: memref<128x128xbf16, #tpu.memory_space<vmem>>, %arg6: memref<1x4x16x32xbf16, #tpu.memory_space<vmem>>, %arg7: memref<1x4x16x32xbf16, #tpu.memory_space<vmem>>) attributes {dimension_semantics = [#tpu.dimension_semantics<parallel>], iteration_bounds = array<i64: 2>, scalar_prefetch = 0 : i64, scratch_operands = 0 : i64, tpu.core_type = #tpu.core_type<tc>, window_params = [{transform_indices = @transform_0, window_bounds = array<i64: 1, 16, 128>}, {pipeline_mode = #tpu.pipeline_mode<synchronous>, transform_indices = @transform_1, window_bounds = array<i64: 1, 128>}, {pipeline_mode = #tpu.pipeline_mode<synchronous>, transform_indices = @transform_2, window_bounds = array<i64: 1, 128>}, {pipeline_mode = #tpu.pipeline_mode<synchronous>, transform_indices = @transform_3, window_bounds = array<i64: 128, 128>}, {pipeline_mode = #tpu.pipeline_mode<synchronous>, transform_indices = @transform_4, window_bounds = array<i64: 128, 128>}, {transform_indices = @transform_5, window_bounds = array<i64: 1, 4, 16, 32>}, {transform_indices = @transform_6, window_bounds = array<i64: 1, 4, 16, 32>}]} {
    %c0 = arith.constant 0 : index
    %c0_0 = arith.constant 0 : index
    %0 = vector.load %arg2[%c0, %c0_0] : memref<1x128xf32, #tpu.memory_space<vmem>>, vector<1x128xf32>
    %c0_1 = arith.constant 0 : index
    %c0_2 = arith.constant 0 : index
    %1 = vector.load %arg3[%c0_1, %c0_2] : memref<1x128xf32, #tpu.memory_space<vmem>>, vector<1x128xf32>
    %c0_3 = arith.constant 0 : index
    %c0_4 = arith.constant 0 : index
    %c0_5 = arith.constant 0 : index
    %2 = vector.load %arg1[%c0_3, %c0_4, %c0_5] : memref<1x16x128xbf16, #tpu.memory_space<vmem>>, vector<1x16x128xbf16>
    %3 = vector.shape_cast %2 : vector<1x16x128xbf16> to vector<16x128xbf16>
    %4 = arith.extf %3 : vector<16x128xbf16> to vector<16x128xf32>
    %cst = arith.constant dense<0.000000e+00> : vector<16xf32>
    %5 = vector.multi_reduction <add>, %4, %cst [1] : vector<16x128xf32> to vector<16xf32>
    %6 = vector.shape_cast %5 : vector<16xf32> to vector<16x1xf32>
    %cst_6 = arith.constant 1.280000e+02 : f32
    %7 = vector.broadcast %cst_6 : f32 to vector<16x1xf32>
    %8 = arith.divf %6, %7 : vector<16x1xf32>
    %9 = vector.broadcast %8 : vector<16x1xf32> to vector<16x128xf32>
    %10 = arith.subf %4, %9 : vector<16x128xf32>
    %11 = arith.mulf %10, %10 : vector<16x128xf32>
    %cst_7 = arith.constant dense<0.000000e+00> : vector<16xf32>
    %12 = vector.multi_reduction <add>, %11, %cst_7 [1] : vector<16x128xf32> to vector<16xf32>
    %13 = vector.shape_cast %12 : vector<16xf32> to vector<16x1xf32>
    %cst_8 = arith.constant 1.280000e+02 : f32
    %14 = vector.broadcast %cst_8 : f32 to vector<16x1xf32>
    %15 = arith.divf %13, %14 : vector<16x1xf32>
    %16 = vector.broadcast %8 : vector<16x1xf32> to vector<16x128xf32>
    %17 = arith.subf %4, %16 : vector<16x128xf32>
    %cst_9 = arith.constant 9.99999974E-6 : f32
    %18 = vector.broadcast %cst_9 : f32 to vector<16x1xf32>
    %19 = arith.addf %15, %18 : vector<16x1xf32>
    %20 = math.rsqrt %19 : vector<16x1xf32>
    %21 = vector.broadcast %20 : vector<16x1xf32> to vector<16x128xf32>
    %22 = arith.mulf %17, %21 : vector<16x128xf32>
    %23 = vector.broadcast %0 : vector<1x128xf32> to vector<16x128xf32>
    %24 = arith.mulf %22, %23 : vector<16x128xf32>
    %25 = vector.broadcast %1 : vector<1x128xf32> to vector<16x128xf32>
    %26 = arith.addf %24, %25 : vector<16x128xf32>
    %27 = arith.truncf %26 : vector<16x128xf32> to vector<16x128xbf16>
    %c0_10 = arith.constant 0 : index
    %c0_11 = arith.constant 0 : index
    %28 = vector.load %arg4[%c0_10, %c0_11] : memref<128x128xbf16, #tpu.memory_space<vmem>>, vector<128x128xbf16>
    %cst_12 = arith.constant dense<0.000000e+00> : vector<16x128xf32>
    %29 = tpu.matmul %27, %28, %cst_12 {dimension_numbers = #tpu.dot_dimension_numbers<[1], [0], [0], [1], [0, 0, 1, 1], [], []>} : vector<16x128xbf16>, vector<128x128xbf16>, vector<16x128xf32> -> vector<16x128xf32>
    %30 = arith.truncf %29 : vector<16x128xf32> to vector<16x128xbf16>
    %c0_13 = arith.constant 0 : index
    %c0_14 = arith.constant 0 : index
    %31 = vector.load %arg5[%c0_13, %c0_14] : memref<128x128xbf16, #tpu.memory_space<vmem>>, vector<128x128xbf16>
    %cst_15 = arith.constant dense<0.000000e+00> : vector<16x128xf32>
    %32 = tpu.matmul %27, %31, %cst_15 {dimension_numbers = #tpu.dot_dimension_numbers<[1], [0], [0], [1], [0, 0, 1, 1], [], []>} : vector<16x128xbf16>, vector<128x128xbf16>, vector<16x128xf32> -> vector<16x128xf32>
    %33 = arith.truncf %32 : vector<16x128xf32> to vector<16x128xbf16>
    %34 = vector.extract_strided_slice %30 {offsets = [0, 0], sizes = [16, 32], strides = [1, 1]} : vector<16x128xbf16> to vector<16x32xbf16>
    %c0_16 = arith.constant 0 : index
    %c0_17 = arith.constant 0 : index
    %c0_18 = arith.constant 0 : index
    %c0_19 = arith.constant 0 : index
    %35 = vector.load %arg6[%c0_16, %c0_17, %c0_18, %c0_19] : memref<1x4x16x32xbf16, #tpu.memory_space<vmem>>, vector<1x1x16x32xbf16>
    %36 = vector.shape_cast %35 : vector<1x1x16x32xbf16> to vector<16x32xbf16>
    %37 = vector.shape_cast %34 : vector<16x32xbf16> to vector<1x1x16x32xbf16>
    tpu.vector_store %arg6[%c0_16, %c0_17, %c0_18, %c0_19], %37 {strides = array<i32>} : memref<1x4x16x32xbf16, #tpu.memory_space<vmem>>, vector<1x1x16x32xbf16>,
    %38 = vector.extract_strided_slice %33 {offsets = [0, 0], sizes = [16, 32], strides = [1, 1]} : vector<16x128xbf16> to vector<16x32xbf16>
    %c0_20 = arith.constant 0 : index
    %c0_21 = arith.constant 0 : index
    %c0_22 = arith.constant 0 : index
    %c0_23 = arith.constant 0 : index
    %39 = vector.load %arg7[%c0_20, %c0_21, %c0_22, %c0_23] : memref<1x4x16x32xbf16, #tpu.memory_space<vmem>>, vector<1x1x16x32xbf16>
    %40 = vector.shape_cast %39 : vector<1x1x16x32xbf16> to vector<16x32xbf16>
    %41 = vector.shape_cast %38 : vector<16x32xbf16> to vector<1x1x16x32xbf16>
    tpu.vector_store %arg7[%c0_20, %c0_21, %c0_22, %c0_23], %41 {strides = array<i32>} : memref<1x4x16x32xbf16, #tpu.memory_space<vmem>>, vector<1x1x16x32xbf16>,
    %42 = vector.extract_strided_slice %30 {offsets = [0, 32], sizes = [16, 32], strides = [1, 1]} : vector<16x128xbf16> to vector<16x32xbf16>
    %c0_24 = arith.constant 0 : index
    %c1 = arith.constant 1 : index
    %c0_25 = arith.constant 0 : index
    %c0_26 = arith.constant 0 : index
    %43 = vector.load %arg6[%c0_24, %c1, %c0_25, %c0_26] : memref<1x4x16x32xbf16, #tpu.memory_space<vmem>>, vector<1x1x16x32xbf16>
    %44 = vector.shape_cast %43 : vector<1x1x16x32xbf16> to vector<16x32xbf16>
    %45 = vector.shape_cast %42 : vector<16x32xbf16> to vector<1x1x16x32xbf16>
    tpu.vector_store %arg6[%c0_24, %c1, %c0_25, %c0_26], %45 {strides = array<i32>} : memref<1x4x16x32xbf16, #tpu.memory_space<vmem>>, vector<1x1x16x32xbf16>,
    %46 = vector.extract_strided_slice %33 {offsets = [0, 32], sizes = [16, 32], strides = [1, 1]} : vector<16x128xbf16> to vector<16x32xbf16>
    %c0_27 = arith.constant 0 : index
    %c1_28 = arith.constant 1 : index
    %c0_29 = arith.constant 0 : index
    %c0_30 = arith.constant 0 : index
    %47 = vector.load %arg7[%c0_27, %c1_28, %c0_29, %c0_30] : memref<1x4x16x32xbf16, #tpu.memory_space<vmem>>, vector<1x1x16x32xbf16>
    %48 = vector.shape_cast %47 : vector<1x1x16x32xbf16> to vector<16x32xbf16>
    %49 = vector.shape_cast %46 : vector<16x32xbf16> to vector<1x1x16x32xbf16>
    tpu.vector_store %arg7[%c0_27, %c1_28, %c0_29, %c0_30], %49 {strides = array<i32>} : memref<1x4x16x32xbf16, #tpu.memory_space<vmem>>, vector<1x1x16x32xbf16>,
    %50 = vector.extract_strided_slice %30 {offsets = [0, 64], sizes = [16, 32], strides = [1, 1]} : vector<16x128xbf16> to vector<16x32xbf16>
    %c0_31 = arith.constant 0 : index
    %c2 = arith.constant 2 : index
    %c0_32 = arith.constant 0 : index
    %c0_33 = arith.constant 0 : index
    %51 = vector.load %arg6[%c0_31, %c2, %c0_32, %c0_33] : memref<1x4x16x32xbf16, #tpu.memory_space<vmem>>, vector<1x1x16x32xbf16>
    %52 = vector.shape_cast %51 : vector<1x1x16x32xbf16> to vector<16x32xbf16>
    %53 = vector.shape_cast %50 : vector<16x32xbf16> to vector<1x1x16x32xbf16>
    tpu.vector_store %arg6[%c0_31, %c2, %c0_32, %c0_33], %53 {strides = array<i32>} : memref<1x4x16x32xbf16, #tpu.memory_space<vmem>>, vector<1x1x16x32xbf16>,
    %54 = vector.extract_strided_slice %33 {offsets = [0, 64], sizes = [16, 32], strides = [1, 1]} : vector<16x128xbf16> to vector<16x32xbf16>
    %c0_34 = arith.constant 0 : index
    %c2_35 = arith.constant 2 : index
    %c0_36 = arith.constant 0 : index
    %c0_37 = arith.constant 0 : index
    %55 = vector.load %arg7[%c0_34, %c2_35, %c0_36, %c0_37] : memref<1x4x16x32xbf16, #tpu.memory_space<vmem>>, vector<1x1x16x32xbf16>
    %56 = vector.shape_cast %55 : vector<1x1x16x32xbf16> to vector<16x32xbf16>
    %57 = vector.shape_cast %54 : vector<16x32xbf16> to vector<1x1x16x32xbf16>
    tpu.vector_store %arg7[%c0_34, %c2_35, %c0_36, %c0_37], %57 {strides = array<i32>} : memref<1x4x16x32xbf16, #tpu.memory_space<vmem>>, vector<1x1x16x32xbf16>,
    %58 = vector.extract_strided_slice %30 {offsets = [0, 96], sizes = [16, 32], strides = [1, 1]} : vector<16x128xbf16> to vector<16x32xbf16>
    %c0_38 = arith.constant 0 : index
    %c3 = arith.constant 3 : index
    %c0_39 = arith.constant 0 : index
    %c0_40 = arith.constant 0 : index
    %59 = vector.load %arg6[%c0_38, %c3, %c0_39, %c0_40] : memref<1x4x16x32xbf16, #tpu.memory_space<vmem>>, vector<1x1x16x32xbf16>
    %60 = vector.shape_cast %59 : vector<1x1x16x32xbf16> to vector<16x32xbf16>
    %61 = vector.shape_cast %58 : vector<16x32xbf16> to vector<1x1x16x32xbf16>
    tpu.vector_store %arg6[%c0_38, %c3, %c0_39, %c0_40], %61 {strides = array<i32>} : memref<1x4x16x32xbf16, #tpu.memory_space<vmem>>, vector<1x1x16x32xbf16>,
    %62 = vector.extract_strided_slice %33 {offsets = [0, 96], sizes = [16, 32], strides = [1, 1]} : vector<16x128xbf16> to vector<16x32xbf16>
    %c0_41 = arith.constant 0 : index
    %c3_42 = arith.constant 3 : index
    %c0_43 = arith.constant 0 : index
    %c0_44 = arith.constant 0 : index
    %63 = vector.load %arg7[%c0_41, %c3_42, %c0_43, %c0_44] : memref<1x4x16x32xbf16, #tpu.memory_space<vmem>>, vector<1x1x16x32xbf16>
    %64 = vector.shape_cast %63 : vector<1x1x16x32xbf16> to vector<16x32xbf16>
    %65 = vector.shape_cast %62 : vector<16x32xbf16> to vector<1x1x16x32xbf16>
    tpu.vector_store %arg7[%c0_41, %c3_42, %c0_43, %c0_44], %65 {strides = array<i32>} : memref<1x4x16x32xbf16, #tpu.memory_space<vmem>>, vector<1x1x16x32xbf16>,
    return
  }
  func.func @transform_0(%arg0: i32) -> (i32, i32, i32) {
    %c0_i32 = arith.constant 0 : i32
    %c0_i32_0 = arith.constant 0 : i32
    %c0_i32_1 = arith.constant 0 : i32
    return %arg0, %c0_i32, %c0_i32_0 : i32, i32, i32
  }
  func.func @transform_1(%arg0: i32) -> (i32, i32) {
    %c0_i32 = arith.constant 0 : i32
    %c0_i32_0 = arith.constant 0 : i32
    %c0_i32_1 = arith.constant 0 : i32
    return %c0_i32, %c0_i32_0 : i32, i32
  }
  func.func @transform_2(%arg0: i32) -> (i32, i32) {
    %c0_i32 = arith.constant 0 : i32
    %c0_i32_0 = arith.constant 0 : i32
    %c0_i32_1 = arith.constant 0 : i32
    return %c0_i32, %c0_i32_0 : i32, i32
  }
  func.func @transform_3(%arg0: i32) -> (i32, i32) {
    %c0_i32 = arith.constant 0 : i32
    %c0_i32_0 = arith.constant 0 : i32
    %c0_i32_1 = arith.constant 0 : i32
    return %c0_i32, %c0_i32_0 : i32, i32
  }
  func.func @transform_4(%arg0: i32) -> (i32, i32) {
    %c0_i32 = arith.constant 0 : i32
    %c0_i32_0 = arith.constant 0 : i32
    %c0_i32_1 = arith.constant 0 : i32
    return %c0_i32, %c0_i32_0 : i32, i32
  }
  func.func @transform_5(%arg0: i32) -> (i32, i32, i32, i32) {
    %c0_i32 = arith.constant 0 : i32
    %c0_i32_0 = arith.constant 0 : i32
    %c0_i32_1 = arith.constant 0 : i32
    %c0_i32_2 = arith.constant 0 : i32
    return %arg0, %c0_i32, %c0_i32_0, %c0_i32_1 : i32, i32, i32, i32
  }
  func.func @transform_6(%arg0: i32) -> (i32, i32, i32, i32) {
    %c0_i32 = arith.constant 0 : i32
    %c0_i32_0 = arith.constant 0 : i32
    %c0_i32_1 = arith.constant 0 : i32
    %c0_i32_2 = arith.constant 0 : i32
    return %arg0, %c0_i32, %c0_i32_0, %c0_i32_1 : i32, i32, i32, i32
  }
}

</mosaic_0001>

<bundles_post_ra>
// kernel: tpu_custom_call.1
= control target key start
LH: loop header
LB: loop body
LE: loop exit
PB: predicated region body
PF: predicated region fallthrough
CT: control target
= control target key end

     0   :  { %12 = vsyncpa [#allocation3], 0  ;;  %s1599_s0 = inlined_call_operand.hbm [shape: bf16[2,16,128], index: 0, kind: input, shape index: {}]   ;;  %s1600_s1 = inlined_call_operand.vmem [shape: f32[1,128], index: 1, kind: input, shape index: {}]   ;;  %s1601_s2 = inlined_call_operand.vmem [shape: f32[1,128], index: 2, kind: input, shape index: {}]   ;;  %s1602_s3 = inlined_call_operand.hbm [shape: bf16[128,128], index: 3, kind: input, shape index: {}]   ;;  %s1603_s4 = inlined_call_operand.hbm [shape: bf16[128,128], index: 4, kind: input, shape index: {}]   ;;  %s1604_s5 = inlined_call_operand.hbm [shape: bf16[2,4,16,32], index: 5, kind: output, shape index: {0}]   ;;  %s1605_s6 = inlined_call_operand.hbm [shape: bf16[2,4,16,32], index: 6, kind: output, shape index: {1}]  }
   0x1   :  { %14 = vsyncpa [#allocation3 + $0x1], 0 }
   0x2   :  { %15 = vsyncpa [#allocation6], 0 }
   0x3   :  { %16 = vsyncpa [#allocation4], 0 }
   0x4   :  { %18 = vsyncpa [#allocation4 + $0x1], 0 }
   0x5   :  { %19 = vsyncpa [#allocation10], 0 }
   0x6   :  { %21 = vsyncpa [#allocation10 + $0x1], 0  ;;  %s1264_s21 = smov 0   ;;  %s1266_s22 = smov 0  }
   0x7   :  { %s1268_s23 = smov 0   ;;  %s1270_s24 = smov 0  }
   0x8 LB: > { %s1285_s25 = sadd.s32 4294967295, %s1214_s24   ;;  %s801_s26 = sadd.s32 4294967294, %s1214_s24   ;;  %s1214_s24 = sphi %s1270_s24, %s1626_s24   ;;  %s1210_s23 = sphi %s1268_s23, %s1625_s23   ;;  %s1206_s22 = sphi %s1266_s22, %s1624_s22   ;;  %s1202_s21 = sphi %s1264_s21, %s1623_s21  }
   0x9   : > { %p47_p0 = scmp.ne.s32.totalorder %s1206_s22, %s1202_s21  ;;  %p1606_p1 = scmp.eq.s32.totalorder %s1285_s25, 0 }
   0xa   : > { %p161_p3 = scmp.eq.s32.totalorder %s801_s26, 1  ;;  %p802_p5 = scmp.ge.s32.totalorder %s1214_s24, 1 }
   0xb   : > { %p1294_p4 = por %p1606_p1, %p47_p0  ;;  %p194_p7 = scmp.lt.s32.totalorder %s1214_s24, 3 }
   0xc   : > { %p1299_p6 = por %p161_p3, %p47_p0  ;;  %s1216_s30 = smov [#allocation5]  }
   0xd   : > { %s1609_s27 = scalar_select %p1294_p4, 1, 0 }
   0xe   : > { %s1610_s28 = scalar_select %p1299_p6, 1, 0 }
   0xf   : > { %p1304_p8 = pnand %p802_p5, %p194_p7  ;;  %s212_s7 = sshll.u32 %s1216_s30, 4  ;;  %s1308_s7 = int_to_ptr.vmem [resolvable:$true] %s212_s7 }
  0x10   : > { %s1217_s9 = smov [#allocation7]   ;;  %s1026_s13 = scalar_lea.hbm %s1602_s3, 1024 }
  0x11   : > { %p940_p9 = pneg %p1304_p8  ;;  %s225_s10 = sshll.u32 %s1217_s9, 4  ;;  %s1319_s10 = int_to_ptr.vmem [resolvable:$true] %s225_s10 }
  0x12   : > { %p1027_p12 = scmp.ne.s32.totalorder %s1602_s3, %s1026_s13  ;;  %p1033_p5 = scmp.lt.u32.totalorder %s1026_s13, %s1602_s3 }
  0x13   : > { %p1315_p11 = pnand %p940_p9, %p1606_p1 }
  0x15   : > { %p1028_p13 = pneg %p1315_p11 }
  0x17   : > { %p1029_p0 = pnand %p1028_p13, %p1027_p12 }
  0x19   : > { %p1030_p3 = pneg %p1029_p0 }
  0x1b   : > { %p1035_p7 = pnand %p1033_p5, %p1030_p3 }
  0x1d   : > { %1038 = shalt.err (!%p1035_p7)
}
  0x1e   : > { %s1039_s18 = scalar_lea.vmem %s1308_s7, 1024  ;;  %p1047_p2 = scmp.lt.s32.totalorder %s1308_s7, %s1308_s7 }
  0x1f   : > { %p1040_p9 = scmp.ne.s32.totalorder %s1308_s7, %s1039_s18  ;;  %p1048_p12 = scmp.lt.s32.totalorder %s1039_s18, %s1039_s18 }
  0x21   : > { %p1042_p10 = pnand %p1040_p9, %p1028_p13  ;;  %p1049_p0 = por %p1048_p12, %p1047_p2 }
  0x23   : > { %p1043_p1 = pneg %p1042_p10 }
  0x25   : > { %p1050_p6 = pnand %p1049_p0, %p1043_p1 }
  0x27   : > { %1053 = shalt.err (!%p1050_p6)
}
  0x28   : > { %s1218_s19 = smov 64   ;;  %s1219_s20 = smov 4  }
  0x29   : > { %943 = dma.hbm_to_vmem [thread:$0]  (!%p1315_p11), %s1602_s3, 1024, %s1308_s7, [#allocation6], %s1218_s19, %s1218_s19, %s1219_s20  }
  0x2a   : > { %s1054_s12 = scalar_lea.hbm %s1603_s4, 1024 }
  0x2b   : > { %p1055_p1 = scmp.ne.s32.totalorder %s1603_s4, %s1054_s12  ;;  %p1061_p10 = scmp.lt.u32.totalorder %s1054_s12, %s1603_s4 }
  0x2d   : > { %p1057_p2 = pnand %p1055_p1, %p1028_p13 }
  0x2f   : > { %p1058_p6 = pneg %p1057_p2 }
  0x31   : > { %p1063_p3 = pnand %p1061_p10, %p1058_p6 }
  0x33   : > { %1066 = shalt.err (!%p1063_p3)
}
  0x34   : > { %s1067_s7 = scalar_lea.vmem %s1319_s10, 1024  ;;  %p1075_p12 = scmp.lt.s32.totalorder %s1319_s10, %s1319_s10 }
  0x35   : > { %p1068_p5 = scmp.ne.s32.totalorder %s1319_s10, %s1067_s7  ;;  %p1076_p0 = scmp.lt.s32.totalorder %s1067_s7, %s1067_s7 }
  0x37   : > { %p1070_p7 = pnand %p1068_p5, %p1028_p13  ;;  %p1077_p1 = por %p1076_p0, %p1075_p12 }
  0x39   : > { %p1071_p9 = pneg %p1070_p7 }
  0x3b   : > { %p1078_p2 = pnand %p1077_p1, %p1071_p9 }
  0x3d   : > { %1081 = shalt.err (!%p1078_p2)
}
  0x3e   : > { %946 = dma.hbm_to_vmem [thread:$0]  (!%p1315_p11), %s1603_s4, 1024, %s1319_s10, [#allocation6], %s1218_s19, %s1218_s19, %s1219_s20  }
  0x3f   : > { %s1380_s8 = sadd.s32 1, %s1214_s24   ;;  %s34_s26 = sadd.s32 1, %s1210_s23 }
  0x40   : > { %s31_s30 = ssub.s32 %s1214_s24, %s1380_s8  ;;  %p41_p13 = scmp.ne.s32.totalorder %s1210_s23, %s1206_s22 }
  0x41   : > { %p32_p6 = scmp.eq.s32.totalorder %s31_s30, 0  ;;  %p42_p10 = scmp.eq.s32.totalorder %s1214_s24, 0 }
  0x42   : > { %p1613_p3 = scmp.eq.s32.totalorder %s1285_s25, 1  ;;  %p960_p7 = scmp.lt.s32.totalorder %s1214_s24, 2 }
  0x43   : > { %s1396_s11 = scalar_select %p32_p6, %s1210_s23, %s34_s26  }
  0x44   : > { %p1390_p5 = por %p1613_p3, %p41_p13  ;;  %p43_p9 = por %p42_p10, %p41_p13 }
  0x45   : > { %s239_s12 = sand.u32 1, %s1210_s23   ;;  %s857_s10 = sshll.u32 %s1214_s24, 7 }
  0x46   : > { %s1614_s9 = scalar_select %p1390_p5, 1, 0 }
  0x47   : > { %s806_s13 = sshll.u32 %s239_s12, 3  ;;  %s1403_s16 = scalar_lea.hbm %s1599_s0, %s857_s10 }
  0x48   : > { %s243_s7 = scalar_lea.vmem [#allocation2], %s806_s13  ;;  %p1407_p11 = pnand %p960_p7, %p43_p9 }
  0x49   : > { %s250_s17 = sshll.u32 %s243_s7, 4  ;;  %s1411_s26 = scalar_lea.sflag [#allocation3], %s239_s12  ;;  %s1405_s17 = int_to_ptr.vmem [resolvable:$true] %s250_s17 }
  0x4a   : > { %s1082_s30 = scalar_lea.hbm %s1403_s16, 128  ;;  %p1084_p0 = pneg %p1407_p11 }
  0x4b   : > { %p1083_p12 = scmp.ne.s32.totalorder %s1403_s16, %s1082_s30  ;;  %s1087_s14 = scalar_lea.hbm %s1599_s0, 256 }
  0x4c   : > { %p1088_p13 = scmp.lt.u32.totalorder %s1403_s16, %s1599_s0  ;;  %p1089_p6 = scmp.lt.u32.totalorder %s1087_s14, %s1082_s30 }
  0x4d   : > { %p1085_p1 = pnand %p1084_p0, %p1083_p12  ;;  %p1091_p3 = scmp.lt.u32.totalorder %s1082_s30, %s1403_s16 }
  0x4e   : > { %p1090_p10 = por %p1089_p6, %p1088_p13 }
  0x4f   : > { %p1086_p2 = pneg %p1085_p1 }
  0x50   : > { %p1092_p7 = por %p1091_p3, %p1090_p10 }
  0x52   : > { %p1093_p9 = pnand %p1092_p7, %p1086_p2 }
  0x54   : > { %1096 = shalt.err (!%p1093_p9)
}
  0x55   : > { %s1097_s12 = scalar_lea.vmem %s1405_s17, 128  ;;  %s1220_s13 = smov [#allocation2]  }
  0x56   : > { %p1098_p12 = scmp.ne.s32.totalorder %s1405_s17, %s1097_s12  ;;  %s1102_s10 = sshll.u32 %s1220_s13, 4  ;;  %s1103_s10 = int_to_ptr.vmem [resolvable:$false] %s1102_s10 }
  0x57   : > { %s1104_s15 = scalar_lea.vmem %s1103_s10, 256  ;;  %p1105_p4 = scmp.lt.s32.totalorder %s1405_s17, %s1103_s10 }
  0x58   : > { %p1100_p1 = pnand %p1098_p12, %p1084_p0  ;;  %p1106_p13 = scmp.lt.s32.totalorder %s1104_s15, %s1097_s12 }
  0x5a   : > { %p1101_p5 = pneg %p1100_p1  ;;  %p1107_p6 = por %p1106_p13, %p1105_p4 }
  0x5c   : > { %p1108_p10 = pnand %p1107_p6, %p1101_p5 }
  0x5e   : > { %1111 = shalt.err (!%p1108_p10)
}
  0x5f   : > { %950 = dma.hbm_to_vmem [thread:$0]  (!%p1407_p11), %s1403_s16, 128, %s1405_s17, %s1411_s26, %s1218_s19, %s1218_s19, %s1219_s20  }
  0x60   : > { %262 = sbr.rel (%p1304_p8) target bundleno = 814 (0x32e), region = 40  ;;  %s1445_s30 = sand.u32 (!%p1304_p8), 1, %s1206_s22  }
  0x61   : > { %s810_s14 = sshll.u32 (!%p1304_p8), %s1445_s30, 3  ;;  %s265_s7 = scalar_lea.sflag (!%p1304_p8), [#allocation3], %s1445_s30 }
  0x62   : > { %s268_s12 = scalar_lea.vmem (!%p1304_p8), [#allocation2], %s810_s14  ;;  %p1616_p4 = scmp.ne.s32.totalorder (!%p1304_p8), %s1609_s27, 0 }
  0x67   : > { %1185 = dma.done.wait (%p1616_p4), %s265_s7, 128  }
  0x68   : > { %1187 = vsyncadd (%p1616_p4), %s265_s7, 4294967168  ;;  %p1617_p5 = scmp.eq.s32.totalorder %s1285_s25, 0 }
  0x6a   : > { %1189 = dma.done.wait (%p1617_p5), [#allocation6], 2048   ;;  %p1618_p11 = pmov %p1617_p5 }
  0x6b   : > { %v865_v0 = vld [vmem:[%s268_s12] sm:$0xff]   ;;  %v1006_v3 = vld [vmem:[#allocation5] sm:$0xff]   ;;  %v1221_v5 = vmov 0.0   ;;  %v1008_v14 = vld [vmem:[#allocation5 + $0x8] sm:$0xff]   ;;  %vm1222_vm0 = vmmov 0   ;;  %s813_s16 = sshll.u32 %s1445_s30, 5 }
  0x6c   : > { %1191 = vsyncadd (%p1618_p11), [#allocation6], 4294965248  ;;  %v866_v1 = vunpack.c.l.bf16 %v865_v0  ;;  %v867_v2 = vunpack.c.h.bf16 %v865_v0  ;;  %v1007_v4 = vld [vmem:[#allocation7] sm:$0xff]   ;;  %886 = vmatprep.subr.bf16.mxu0 %v1221_v5  ;;  %906 = vmatprep.subr.bf16.mxu1 %v1221_v5  ;;  %v1009_v15 = vld [vmem:[#allocation7 + $0x8] sm:$0xff]   ;;  %vm576_vm1 = vcmask 257024   ;;  %s1464_s17 = scalar_lea.vmem [#allocation8], %s813_s16 }
  0x6d   : > { %887 = vmatpush3.bf16.msra.mxu0 %v1006_v3  ;;  %907 = vmatpush3.bf16.msra.mxu1 %v1007_v4  ;;  %v1010_v16 = vld [vmem:[#allocation5 + $0x10] sm:$0xff]   ;;  %v1012_v18 = vld [vmem:[#allocation5 + $0x18] sm:$0xff]   ;;  %v1014_v20 = vld [vmem:[#allocation5 + $0x20] sm:$0xff]   ;;  %s1468_s18 = scalar_lea.vmem [#allocation9], %s813_s16  ;;  %s1223_s26 = smov 96  }
  0x6e   : > { %317 = vadd.xlane.f32.xlu0 %v866_v1  ;;  %888 = vmatprep.subr.bf16.mxu0 %v1221_v5  ;;  %v1011_v17 = vld [vmem:[#allocation7 + $0x10] sm:$0xff]   ;;  %v1013_v19 = vld [vmem:[#allocation7 + $0x18] sm:$0xff]   ;;  %v1015_v21 = vld [vmem:[#allocation7 + $0x20] sm:$0xff]   ;;  %s1224_s13 = smov 64   ;;  %s1225_s10 = smov 32  }
  0x6f   : > { %908 = vmatprep.subr.bf16.mxu1 %v1221_v5  ;;  %902 = vmatprep.mubr.msk.bf16.mxu0 %vm1222_vm0, %v1221_v5  ;;  %v1016_v22 = vld [vmem:[#allocation5 + $0x28] sm:$0xff]   ;;  %v1018_v24 = vld [vmem:[#allocation5 + $0x30] sm:$0xff]   ;;  %v1020_v26 = vld [vmem:[#allocation5 + $0x38] sm:$0xff]   ;;  %s862_s15 = sshll.u32 %s1285_s25, 9  ;;  %s661_s14 = sshll.u32 %s1464_s17, 4  ;;  %s1509_s14 = int_to_ptr.vmem [resolvable:$true] %s661_s14 }
  0x70   : > { %922 = vmatprep.mubr.msk.bf16.mxu1 %vm1222_vm0, %v1221_v5  ;;  %v1017_v23 = vld [vmem:[#allocation7 + $0x28] sm:$0xff]   ;;  %v1019_v25 = vld [vmem:[#allocation7 + $0x30] sm:$0xff]   ;;  %v1021_v27 = vld [vmem:[#allocation7 + $0x38] sm:$0xff]   ;;  %s1507_s27 = scalar_lea.hbm %s1604_s5, %s862_s15  ;;  %s643_s19 = scalar_lea.sflag [#allocation4], %s1445_s30 }
  0x71   : > { %889 = vmatpush3.bf16.msra.mxu0 %v1008_v14  ;;  %909 = vmatpush3.bf16.msra.mxu1 %v1009_v15  ;;  %v815_v36 = vld [vmem:[%s1600_s1] ss:$0 sm:$0xff]  ;;  %s1112_s20 = scalar_lea.vmem %s1509_s14, 512  ;;  %p1619_p0 = scmp.ne.s32.totalorder %s1614_s9, 0 }
  0x72   : > { %319 = vadd.xlane.f32.xlu0 %v867_v2  ;;  %890 = vmatprep.subr.bf16.mxu0 %v1221_v5  ;;  %v816_v40 = vld [vmem:[%s1601_s2] ss:$0 sm:$0xff]  ;;  %p1113_p8 = scmp.ne.s32.totalorder %s1509_s14, %s1112_s20  ;;  %s1226_s16 = smov [#allocation8]  }
  0x73   : > { %910 = vmatprep.subr.bf16.mxu1 %v1221_v5 }
  0x74   : > { %p1114_p2 = pnand %p1113_p8, %p1619_p0 }
  0x75   : > { %891 = vmatpush3.bf16.msra.mxu0 %v1010_v16  ;;  %911 = vmatpush3.bf16.msra.mxu1 %v1011_v17 }
  0x76   : > { %892 = vmatprep.subr.bf16.mxu0 %v1221_v5  ;;  %912 = vmatprep.subr.bf16.mxu1 %v1221_v5  ;;  %p1115_p3 = pneg %p1114_p2 }
  0x79   : > { %893 = vmatpush3.bf16.msra.mxu0 %v1012_v18  ;;  %913 = vmatpush3.bf16.msra.mxu1 %v1013_v19 }
  0x7a   : > { %894 = vmatprep.subr.bf16.mxu0 %v1221_v5  ;;  %914 = vmatprep.subr.bf16.mxu1 %v1221_v5 }
  0x7d   : > { %895 = vmatpush3.bf16.msra.mxu0 %v1014_v20  ;;  %915 = vmatpush3.bf16.msra.mxu1 %v1015_v21 }
  0x7e   : > { %896 = vmatprep.subr.bf16.mxu0 %v1221_v5  ;;  %916 = vmatprep.subr.bf16.mxu1 %v1221_v5 }
  0x81   : > { %897 = vmatpush3.bf16.msra.mxu0 %v1016_v22  ;;  %917 = vmatpush3.bf16.msra.mxu1 %v1017_v23 }
  0x82   : > { %898 = vmatprep.subr.bf16.mxu0 %v1221_v5  ;;  %918 = vmatprep.subr.bf16.mxu1 %v1221_v5 }
  0x85   : > { %899 = vmatpush3.bf16.msra.mxu0 %v1018_v24  ;;  %919 = vmatpush3.bf16.msra.mxu1 %v1019_v25 }
  0x86   : > { %900 = vmatprep.subr.bf16.mxu0 %v1221_v5  ;;  %920 = vmatprep.subr.bf16.mxu1 %v1221_v5 }
  0x89   : > { %901 = vmatpush3.bf16.msra.mxu0 %v1020_v26  ;;  %921 = vmatpush3.bf16.msra.mxu1 %v1021_v27 }
  0xfb   : > { %v318_v6 = vpop.xlane.xlu0 %317 }
  0xfc   : > { %v322_v7 = vmul.f32 0.0078125, %v318_v6 }
  0xfe   : > { %v324_v8 = vsub.f32 %v866_v1, %v322_v7 }
  0xff   : > { %v320_v9 = vpop.xlane.xlu0 %319 }
 0x100   : > { %v323_v10 = vmul.f32 0.0078125, %v320_v9  ;;  %v326_v11 = vmul.f32 %v324_v8, %v324_v8 }
 0x102   : > { %v325_v12 = vsub.f32 %v867_v2, %v323_v10  ;;  %328 = vadd.xlane.f32.xlu1 %v326_v11 }
 0x104   : > { %v327_v13 = vmul.f32 %v325_v12, %v325_v12 }
 0x106   : > { %330 = vadd.xlane.f32.xlu1 %v327_v13 }
 0x18f   : > { %v329_v28 = vpop.xlane.xlu1 %328 }
 0x190   : > { %v332_v29 = vmul.f32 0.0078125, %v329_v28 }
 0x192   : > { %v334_v30 = vadd.f32 1e-05, %v332_v29 }
 0x193   : > { %v331_v31 = vpop.xlane.xlu1 %330 }
 0x194   : > { %1022 = vrsqrt.f32 %v334_v30  ;;  %v333_v32 = vmul.f32 0.0078125, %v331_v31 }
 0x196   : > { %v335_v33 = vadd.f32 1e-05, %v333_v32 }
 0x198   : > { %1024 = vrsqrt.f32 %v335_v33 }
 0x19e   : > { %v1023_v34 = vpop.eup %1022 }
 0x19f   : > { %v338_v35 = vmul.f32 %v1023_v34, %v324_v8 }
 0x1a1   : > { %v346_v39 = vmul.f32 %v815_v36, %v338_v35 }
 0x1a2   : > { %v1025_v37 = vpop.eup %1024 }
 0x1a3   : > { %v339_v38 = vmul.f32 %v1025_v37, %v325_v12  ;;  %v354_v42 = vadd.f32 %v816_v40, %v346_v39 }
 0x1a5   : > { %v347_v41 = vmul.f32 %v815_v36, %v339_v38 }
 0x1a7   : > { %v355_v43 = vadd.f32 %v816_v40, %v347_v41 }
 0x1a9   : > { %v356_v44 = vpack.c.bf16 %v355_v43, %v354_v42 }
 0x1ab   : > { %903 = vmatmul.mubr.bf16.vlgmr.msra.gmra.mrb[0].mxu0 %v356_v44  ;;  %923 = vmatmul.mubr.bf16.vlgmr.msra.gmra.mrb[0].mxu1 %v356_v44 }
 0x27e   : > { %v455_v45 = vpop.f32.mrb[0].mxu0  ;;  %v561_v46 = vpop.f32.mrb[0].mxu1 }
 0x27f   : > { %v858_v47 = vpack.c.bf16 %v455_v45, %v455_v45  ;;  %v860_v48 = vpack.c.bf16 %v561_v46, %v561_v46  ;;  %v904_v49 = vpop.f32.mrb[1].mxu0  ;;  %v924_v50 = vpop.f32.mrb[1].mxu1 }
 0x280   : > { %v458_v51 = vpop.f32.mrb[2].mxu0  ;;  %v564_v52 = vpop.f32.mrb[2].mxu1 }
 0x281   : > { %577 = vst.msk [vmem:[%s1464_s17] sm:$0xf] %vm576_vm1, %v858_v47  ;;  %586 = vst.msk [vmem:[%s1468_s18] sm:$0xf] %vm576_vm1, %v860_v48  ;;  %v859_v53 = vpack.c.bf16 %v458_v51, %v458_v51  ;;  %v861_v54 = vpack.c.bf16 %v564_v52, %v564_v52  ;;  %597 = vrot.lane.b32.xlu1 %v860_v48, %s1223_s26  ;;  %v925_v55 = vpop.f32.mrb[3].mxu1  ;;  %588 = vrot.lane.b32.xlu0 %v858_v47, %s1223_s26  ;;  %v905_v56 = vpop.f32.mrb[3].mxu0 }
 0x283   : > { %578 = vst.msk [vmem:[%s1464_s17 + $0x4] sm:$0xf] %vm576_vm1, %v859_v53  ;;  %587 = vst.msk [vmem:[%s1468_s18 + $0x4] sm:$0xf] %vm576_vm1, %v861_v54 }
 0x285   : > { %606 = vrot.lane.b32.xlu0 %v858_v47, %s1224_s13  ;;  %590 = vrot.lane.b32.xlu1 %v859_v53, %s1223_s26 }
 0x289   : > { %615 = vrot.lane.b32.xlu0 %v860_v48, %s1224_s13  ;;  %599 = vrot.lane.b32.xlu1 %v861_v54, %s1223_s26  ;;  %s1116_s26 = sshll.u32 %s1226_s16, 4  ;;  %s1117_s26 = int_to_ptr.vmem [resolvable:$false] %s1116_s26 }
 0x28a   : > { %p1119_p7 = scmp.lt.s32.totalorder %s1509_s14, %s1117_s26 }
 0x28d   : > { %624 = vrot.lane.b32.xlu0 %v858_v47, %s1225_s10  ;;  %608 = vrot.lane.b32.xlu1 %v859_v53, %s1224_s13 }
 0x291   : > { %633 = vrot.lane.b32.xlu0 %v860_v48, %s1225_s10  ;;  %617 = vrot.lane.b32.xlu1 %v861_v54, %s1224_s13 }
 0x295   : > { %626 = vrot.lane.b32.xlu1 %v859_v53, %s1225_s10 }
 0x299   : > { %635 = vrot.lane.b32.xlu1 %v861_v54, %s1225_s10  ;;  %s1118_s10 = scalar_lea.vmem %s1117_s26, 1024 }
 0x29a   : > { %p1120_p9 = scmp.lt.s32.totalorder %s1118_s10, %s1112_s20 }
 0x29c   : > { %p1121_p12 = por %p1120_p9, %p1119_p7 }
 0x29e   : > { %p1122_p1 = pnand %p1121_p12, %p1115_p3 }
 0x2f3   : > { %v598_v57 = vpop.permute.xlu1 %597  ;;  %v589_v58 = vpop.permute.xlu0 %588 }
 0x2f4   : > { %839 = vst.msk [vmem:[%s1468_s18 + $0x8] sm:$0xf] %vm576_vm1, %v598_v57  ;;  %837 = vst.msk [vmem:[%s1464_s17 + $0x8] sm:$0xf] %vm576_vm1, %v589_v58 }
 0x2f7   : > { %v607_v59 = vpop.permute.xlu0 %606  ;;  %v591_v60 = vpop.permute.xlu1 %590 }
 0x2f8   : > { %841 = vst.msk [vmem:[%s1464_s17 + $0x10] sm:$0xf] %vm576_vm1, %v607_v59  ;;  %838 = vst.msk [vmem:[%s1464_s17 + $0xc] sm:$0xf] %vm576_vm1, %v591_v60 }
 0x2fb   : > { %v616_v61 = vpop.permute.xlu0 %615  ;;  %v600_v62 = vpop.permute.xlu1 %599 }
 0x2fc   : > { %843 = vst.msk [vmem:[%s1468_s18 + $0x10] sm:$0xf] %vm576_vm1, %v616_v61  ;;  %840 = vst.msk [vmem:[%s1468_s18 + $0xc] sm:$0xf] %vm576_vm1, %v600_v62 }
 0x2ff   : > { %v625_v63 = vpop.permute.xlu0 %624  ;;  %v609_v0 = vpop.permute.xlu1 %608 }
 0x300   : > { %845 = vst.msk [vmem:[%s1464_s17 + $0x18] sm:$0xf] %vm576_vm1, %v625_v63  ;;  %842 = vst.msk [vmem:[%s1464_s17 + $0x14] sm:$0xf] %vm576_vm1, %v609_v0 }
 0x303   : > { %v634_v1 = vpop.permute.xlu0 %633  ;;  %v618_v2 = vpop.permute.xlu1 %617 }
 0x304   : > { %847 = vst.msk [vmem:[%s1468_s18 + $0x18] sm:$0xf] %vm576_vm1, %v634_v1  ;;  %844 = vst.msk [vmem:[%s1468_s18 + $0x14] sm:$0xf] %vm576_vm1, %v618_v2 }
 0x307   : > { %v627_v3 = vpop.permute.xlu1 %626 }
 0x308   : > { %846 = vst.msk [vmem:[%s1464_s17 + $0x1c] sm:$0xf] %vm576_vm1, %v627_v3 }
 0x309   : > { %1125 = shalt.err (!%p1122_p1)
}
 0x30a   : > { %s1126_s17 = scalar_lea.hbm %s1507_s27, 512  ;;  %s1130_s16 = scalar_lea.hbm %s1604_s5, 1024 }
 0x30b   : > { %p1127_p13 = scmp.ne.s32.totalorder %s1507_s27, %s1126_s17  ;;  %p1131_p4 = scmp.lt.u32.totalorder %s1507_s27, %s1604_s5 }
 0x30c   : > { %p1132_p5 = scmp.lt.u32.totalorder %s1130_s16, %s1126_s17  ;;  %p1134_p8 = scmp.lt.u32.totalorder %s1126_s17, %s1507_s27 }
 0x30d   : > { %p1128_p6 = pnand %p1127_p13, %p1619_p0 }
 0x30e   : > { %p1133_p11 = por %p1132_p5, %p1131_p4 }
 0x30f   : > { %p1129_p10 = pneg %p1128_p6 }
 0x310   : > { %p1135_p2 = por %p1134_p8, %p1133_p11 }
 0x312   : > { %p1136_p3 = pnand %p1135_p2, %p1129_p10 }
 0x314   : > { %1139 = shalt.err (!%p1136_p3)
}
 0x315   : > { %s1227_s20 = smov 4   ;;  %s1546_s17 = scalar_lea.hbm %s1605_s6, %s862_s15  ;;  %v636_v4 = vpop.permute.xlu1 %635 }
 0x316   : > { %936 = dma.vmem_to_hbm [thread:$0]  (%p1619_p0), %s1509_s14, 512, %s1507_s27, %s643_s19, %s1224_s13, %s1224_s13, %s1227_s20  }
 0x317   : > { %s1620_s7 = sshll.u32 %s1468_s18, 4  ;;  %848 = vst.msk [vmem:[%s1468_s18 + $0x1c] sm:$0xf] %vm576_vm1, %v636_v4  ;;  %s648_s12 = scalar_lea.sflag [#allocation10], %s1445_s30  ;;  %s1550_s7 = int_to_ptr.vmem [resolvable:$true] %s1620_s7 }
 0x318   : > { %s1140_s16 = scalar_lea.vmem %s1550_s7, 512  ;;  %s1228_s25 = smov [#allocation9]  }
 0x319   : > { %p1141_p7 = scmp.ne.s32.totalorder %s1550_s7, %s1140_s16  ;;  %s1144_s14 = sshll.u32 %s1228_s25, 4  ;;  %s1145_s14 = int_to_ptr.vmem [resolvable:$false] %s1144_s14 }
 0x31a   : > { %s1146_s15 = scalar_lea.vmem %s1145_s14, 1024  ;;  %p1147_p1 = scmp.lt.s32.totalorder %s1550_s7, %s1145_s14 }
 0x31b   : > { %p1142_p9 = pnand %p1141_p7, %p1619_p0  ;;  %p1148_p13 = scmp.lt.s32.totalorder %s1146_s15, %s1140_s16 }
 0x31d   : > { %p1143_p12 = pneg %p1142_p9  ;;  %p1149_p6 = por %p1148_p13, %p1147_p1 }
 0x31f   : > { %p1150_p10 = pnand %p1149_p6, %p1143_p12 }
 0x321   : > { %1153 = shalt.err (!%p1150_p10)
}
 0x322   : > { %s1154_s18 = scalar_lea.hbm %s1546_s17, 512  ;;  %s1158_s26 = scalar_lea.hbm %s1605_s6, 1024 }
 0x323   : > { %p1155_p4 = scmp.ne.s32.totalorder %s1546_s17, %s1154_s18  ;;  %p1159_p8 = scmp.lt.u32.totalorder %s1546_s17, %s1605_s6 }
 0x324   : > { %p1160_p2 = scmp.lt.u32.totalorder %s1158_s26, %s1154_s18  ;;  %p1162_p7 = scmp.lt.u32.totalorder %s1154_s18, %s1546_s17 }
 0x325   : > { %p1156_p5 = pnand %p1155_p4, %p1619_p0 }
 0x326   : > { %p1161_p3 = por %p1160_p2, %p1159_p8 }
 0x327   : > { %p1157_p11 = pneg %p1156_p5 }
 0x328   : > { %p1163_p9 = por %p1162_p7, %p1161_p3 }
 0x32a   : > { %p1164_p12 = pnand %p1163_p9, %p1157_p11 }
 0x32c   : > { %1167 = shalt.err (!%p1164_p12)
}
 0x32d   : > { %937 = dma.vmem_to_hbm [thread:$0]  (%p1619_p0), %s1550_s7, 512, %s1546_s17, %s648_s12, %s1224_s13, %s1224_s13, %s1227_s20  }
 0x32e PF: > { %s692_s16 = sand.u32 1, %s1202_s21   ;;  %p1621_p1 = scmp.ne.s32.totalorder %s1610_s28, 0 }
 0x32f   : > { %p1622_p13 = scmp.ge.s32.totalorder %s1214_s24, 2  ;;  %s693_s25 = scalar_lea.sflag [#allocation4], %s692_s16 }
 0x331   : > { %p952_p6 = pnand %p1622_p13, %p1621_p1 }
 0x333   : > { %1193 = dma.done.wait (!%p952_p6), %s693_s25, 512  }
 0x334   : > { %1195 = vsyncadd (!%p952_p6), %s693_s25, 4294966784  ;;  %s702_s9 = scalar_lea.sflag [#allocation10], %s692_s16 }
 0x335   : > { %1197 = dma.done.wait (!%p952_p6), %s702_s9, 512  }
 0x336   : > { %1199 = vsyncadd (!%p952_p6), %s702_s9, 4294966784  ;;  %p24_p0 = scmp.ge.s32.totalorder %s1380_s8, 4   ;;  %s1623_s21 = smov %s1206_s22 }
 0x337   : > { %s1624_s22 = smov %s1210_s23  ;;  %s1625_s23 = smov %s1396_s11 }
 0x338   : > { %s1626_s24 = smov %s1380_s8  ;;  %26 = sbr.rel (!%p24_p0) target bundleno = 8 (0x8), region = 116 }
 0x33f   :  { %707 = vsyncpa [#allocation3], 1 }
 0x340   :  { %709 = vsyncpa [#allocation3 + $0x1], 1 }
 0x341   :  { %710 = vsyncpa [#allocation6], 1 }
 0x342   :  { %711 = vsyncpa [#allocation4], 1 }
 0x343   :  { %713 = vsyncpa [#allocation4 + $0x1], 1 }
 0x344   :  { %714 = vsyncpa [#allocation10], 1 }
 0x345   :  { %716 = vsyncpa [#allocation10 + $0x1], 1 }

</bundles_post_ra>
